<compile_context>
chip_gen: v7x
topology: tpu7x:2x2x1
jax: 0.10.0
libtpu: 0.0.40
codegen_flags: <defaults>
</compile_context>

<pallas_src>
import jax
import jax.numpy as jnp
from jax.experimental import pallas as pl
from jax.experimental.pallas import tpu as pltpu

LANE = 128


def mlp_kernel(x_ref, w1_ref, b1_ref, w2_ref, b2_ref, w3_ref, b3_ref, o_ref):
    # x / weights arrive as bf16; matmuls accumulate in f32 on the MXU,
    # elementwise math stays in f32.
    x = x_ref[...]

    # fc1 + relu
    h1 = jnp.dot(x, w1_ref[...], preferred_element_type=jnp.float32)
    h1 = jnp.maximum(h1 + b1_ref[...], 0.0)

    # fc2 + relu
    h2 = jnp.dot(h1.astype(jnp.bfloat16), w2_ref[...],
                 preferred_element_type=jnp.float32)
    h2 = jnp.maximum(h2 + b2_ref[...], 0.0)

    # fc3 + sigmoid (output columns lane-padded to 128; wrapper slices back)
    h3 = jnp.dot(h2.astype(jnp.bfloat16), w3_ref[...],
                 preferred_element_type=jnp.float32)
    h3 = h3 + b3_ref[...]
    out = pl.reciprocal(1.0 + jnp.exp(-h3), approx=True)

    o_ref[...] = out.astype(o_ref.dtype)


def mlp_mlc_sm(x, w1, b1, w2, b2, w3, b3, *, block_rows=512):
    """Fused forward pass. x: [B, in]; w*: [in, out]; b*: [1, out] or [out]."""
    B, in_size = x.shape
    out_size = w3.shape[1]

    # bf16 operands for the MXU (f32 accumulation happens inside the kernel).
    x_bf = x.astype(jnp.bfloat16)
    w1_bf = w1.astype(jnp.bfloat16)
    w2_bf = w2.astype(jnp.bfloat16)
    w3_bf = w3.astype(jnp.bfloat16)

    # Lane-dense output: zero-pad fc3 output columns up to a multiple of 128.
    n_pad = max(LANE, ((out_size + LANE - 1) // LANE) * LANE)
    w3_p = jnp.zeros((w3.shape[0], n_pad), jnp.bfloat16).at[:, :out_size].set(w3_bf)
    b3_p = jnp.zeros((1, n_pad), jnp.float32).at[:, :out_size].set(
        b3.reshape(1, -1).astype(jnp.float32))

    b1r = b1.reshape(1, -1).astype(jnp.float32)
    b2r = b2.reshape(1, -1).astype(jnp.float32)

    # Batch tiling: TM a multiple of 8, capped at block_rows; pad B to a tile
    # multiple so the grid covers everything.
    tm = min(block_rows, ((B + 7) // 8) * 8)
    b_pad = ((B + tm - 1) // tm) * tm
    if b_pad != B:
        x_bf = jnp.pad(x_bf, ((0, b_pad - B), (0, 0)))
    nb = b_pad // tm

    def resident(arr):
        # Full-array block whose index never changes -> fetched once, stays
        # VMEM-resident for the whole grid.
        return pl.BlockSpec(arr.shape, lambda i: (0, 0))

    out_padded = pl.pallas_call(
        mlp_kernel,
        out_shape=jax.ShapeDtypeStruct((b_pad, n_pad), jnp.float32),
        grid=(nb,),
        in_specs=[
            pl.BlockSpec((tm, in_size), lambda i: (i, 0)),  # x: batch-tiled
            resident(w1_bf), resident(b1r),                 # weights / biases
            resident(w2_bf), resident(b2r),                 # stay VMEM-resident
            resident(w3_p), resident(b3_p),
        ],
        out_specs=pl.BlockSpec((tm, n_pad), lambda i: (i, 0)),
        compiler_params=pltpu.CompilerParams(
            dimension_semantics=("parallel",),              # v7x: both TCs
        ),
    )(x_bf, w1_bf, b1r, w2_bf, b2r, w3_p, b3_p)

    return out_padded[:B, :out_size]


def xavier_uniform(key, fan_in, fan_out, dtype=jnp.float32):
    # Matches torch.nn.init.xavier_uniform_ bound; stored as [in, out].
    bound = (6.0 / (fan_in + fan_out)) ** 0.5
    return jax.random.uniform(key, (fan_in, fan_out), dtype, -bound, bound)


def reference(x, w1, b1, w2, b2, w3, b3):
    h1 = jnp.maximum(x @ w1 + b1, 0.0)
    h2 = jnp.maximum(h1 @ w2 + b2, 0.0)
    return jax.nn.sigmoid(h2 @ w3 + b3)


if __name__ == "__main__":
    # Small shapes consistent with the module.
    batch = 8
    input_size = 16
    hidden_size = 32        # fc1 out = hidden*4 = 128
    output_size = 8

    key = jax.random.PRNGKey(0)
    kx, k1, k2, k3 = jax.random.split(key, 4)

    x = jax.random.normal(kx, (batch, input_size), jnp.float32)

    w1 = xavier_uniform(k1, input_size, hidden_size * 4)
    b1 = jnp.zeros((1, hidden_size * 4), jnp.float32)
    w2 = xavier_uniform(k2, hidden_size * 4, hidden_size)
    b2 = jnp.zeros((1, hidden_size), jnp.float32)
    w3 = xavier_uniform(k3, hidden_size, output_size)
    b3 = jnp.zeros((1, output_size), jnp.float32)

    out = mlp_mlc_sm(x, w1, b1, w2, b2, w3, b3)
    jax.block_until_ready(out)

    ref = reference(x, w1, b1, w2, b2, w3, b3)
    assert out.shape == (batch, output_size), out.shape
    # bf16 MXU operands + approx reciprocal -> loosen tolerance vs pure-f32 ref.
    err = jnp.max(jnp.abs(out - ref))
    assert jnp.allclose(out, ref, atol=2e-2, rtol=2e-2), f"max abs err {err}"

    print("KERNEL_OK")
</pallas_src>

<mosaic_0001>
module attributes {stable_mosaic.version = 11 : i64} {
  func.func @mlp_kernel(%arg0: i32, %arg1: memref<8x16xbf16, #tpu.memory_space<vmem>>, %arg2: memref<16x128xbf16, #tpu.memory_space<vmem>>, %arg3: memref<1x128xf32, #tpu.memory_space<vmem>>, %arg4: memref<128x32xbf16, #tpu.memory_space<vmem>>, %arg5: memref<1x32xf32, #tpu.memory_space<vmem>>, %arg6: memref<32x128xbf16, #tpu.memory_space<vmem>>, %arg7: memref<1x128xf32, #tpu.memory_space<vmem>>, %arg8: memref<8x128xf32, #tpu.memory_space<vmem>>) attributes {dimension_semantics = [#tpu.dimension_semantics<parallel>], iteration_bounds = array<i64: 1>, scalar_prefetch = 0 : i64, scratch_operands = 0 : i64, tpu.core_type = #tpu.core_type<tc>, window_params = [{transform_indices = @transform_0, window_bounds = array<i64: 8, 16>}, {pipeline_mode = #tpu.pipeline_mode<synchronous>, transform_indices = @transform_1, window_bounds = array<i64: 16, 128>}, {pipeline_mode = #tpu.pipeline_mode<synchronous>, transform_indices = @transform_2, window_bounds = array<i64: 1, 128>}, {pipeline_mode = #tpu.pipeline_mode<synchronous>, transform_indices = @transform_3, window_bounds = array<i64: 128, 32>}, {pipeline_mode = #tpu.pipeline_mode<synchronous>, transform_indices = @transform_4, window_bounds = array<i64: 1, 32>}, {pipeline_mode = #tpu.pipeline_mode<synchronous>, transform_indices = @transform_5, window_bounds = array<i64: 32, 128>}, {pipeline_mode = #tpu.pipeline_mode<synchronous>, transform_indices = @transform_6, window_bounds = array<i64: 1, 128>}, {transform_indices = @transform_7, window_bounds = array<i64: 8, 128>}]} {
    %c0 = arith.constant 0 : index
    %c0_0 = arith.constant 0 : index
    %0 = vector.load %arg1[%c0, %c0_0] : memref<8x16xbf16, #tpu.memory_space<vmem>>, vector<8x16xbf16>
    %c0_1 = arith.constant 0 : index
    %c0_2 = arith.constant 0 : index
    %1 = vector.load %arg2[%c0_1, %c0_2] : memref<16x128xbf16, #tpu.memory_space<vmem>>, vector<16x128xbf16>
    %cst = arith.constant dense<0.000000e+00> : vector<8x128xf32>
    %2 = tpu.matmul %0, %1, %cst {dimension_numbers = #tpu.dot_dimension_numbers<[1], [0], [0], [1], [0, 0, 1, 1], [], []>} : vector<8x16xbf16>, vector<16x128xbf16>, vector<8x128xf32> -> vector<8x128xf32>
    %c0_3 = arith.constant 0 : index
    %c0_4 = arith.constant 0 : index
    %3 = vector.load %arg3[%c0_3, %c0_4] : memref<1x128xf32, #tpu.memory_space<vmem>>, vector<1x128xf32>
    %4 = vector.broadcast %3 : vector<1x128xf32> to vector<8x128xf32>
    %5 = arith.addf %2, %4 : vector<8x128xf32>
    %cst_5 = arith.constant 0.000000e+00 : f32
    %6 = vector.broadcast %cst_5 : f32 to vector<8x128xf32>
    %7 = arith.maximumf %5, %6 : vector<8x128xf32>
    %8 = arith.truncf %7 : vector<8x128xf32> to vector<8x128xbf16>
    %c0_6 = arith.constant 0 : index
    %c0_7 = arith.constant 0 : index
    %9 = vector.load %arg4[%c0_6, %c0_7] : memref<128x32xbf16, #tpu.memory_space<vmem>>, vector<128x32xbf16>
    %cst_8 = arith.constant dense<0.000000e+00> : vector<8x32xf32>
    %10 = tpu.matmul %8, %9, %cst_8 {dimension_numbers = #tpu.dot_dimension_numbers<[1], [0], [0], [1], [0, 0, 1, 1], [], []>} : vector<8x128xbf16>, vector<128x32xbf16>, vector<8x32xf32> -> vector<8x32xf32>
    %c0_9 = arith.constant 0 : index
    %c0_10 = arith.constant 0 : index
    %11 = vector.load %arg5[%c0_9, %c0_10] : memref<1x32xf32, #tpu.memory_space<vmem>>, vector<1x32xf32>
    %12 = vector.broadcast %11 : vector<1x32xf32> to vector<8x32xf32>
    %13 = arith.addf %10, %12 : vector<8x32xf32>
    %cst_11 = arith.constant 0.000000e+00 : f32
    %14 = vector.broadcast %cst_11 : f32 to vector<8x32xf32>
    %15 = arith.maximumf %13, %14 : vector<8x32xf32>
    %16 = arith.truncf %15 : vector<8x32xf32> to vector<8x32xbf16>
    %c0_12 = arith.constant 0 : index
    %c0_13 = arith.constant 0 : index
    %17 = vector.load %arg6[%c0_12, %c0_13] : memref<32x128xbf16, #tpu.memory_space<vmem>>, vector<32x128xbf16>
    %cst_14 = arith.constant dense<0.000000e+00> : vector<8x128xf32>
    %18 = tpu.matmul %16, %17, %cst_14 {dimension_numbers = #tpu.dot_dimension_numbers<[1], [0], [0], [1], [0, 0, 1, 1], [], []>} : vector<8x32xbf16>, vector<32x128xbf16>, vector<8x128xf32> -> vector<8x128xf32>
    %c0_15 = arith.constant 0 : index
    %c0_16 = arith.constant 0 : index
    %19 = vector.load %arg7[%c0_15, %c0_16] : memref<1x128xf32, #tpu.memory_space<vmem>>, vector<1x128xf32>
    %20 = vector.broadcast %19 : vector<1x128xf32> to vector<8x128xf32>
    %21 = arith.addf %18, %20 : vector<8x128xf32>
    %cst_17 = arith.constant 0.000000e+00 : f32
    %22 = vector.broadcast %cst_17 : f32 to vector<8x128xf32>
    %23 = arith.subf %22, %21 : vector<8x128xf32>
    %24 = math.exp %23 : vector<8x128xf32>
    %cst_18 = arith.constant 1.000000e+00 : f32
    %25 = vector.broadcast %cst_18 : f32 to vector<8x128xf32>
    %26 = arith.addf %25, %24 : vector<8x128xf32>
    %27 = tpu.reciprocal %26 {approx = true} : vector<8x128xf32> -> vector<8x128xf32>
    %c0_19 = arith.constant 0 : index
    %c0_20 = arith.constant 0 : index
    %28 = vector.load %arg8[%c0_19, %c0_20] : memref<8x128xf32, #tpu.memory_space<vmem>>, vector<8x128xf32>
    tpu.vector_store %arg8[%c0_19, %c0_20], %27 {strides = array<i32>} : memref<8x128xf32, #tpu.memory_space<vmem>>, vector<8x128xf32>,
    return
  }
  func.func @transform_0(%arg0: i32) -> (i32, i32) {
    %c0_i32 = arith.constant 0 : i32
    %c0_i32_0 = arith.constant 0 : i32
    return %arg0, %c0_i32 : i32, i32
  }
  func.func @transform_1(%arg0: i32) -> (i32, i32) {
    %c0_i32 = arith.constant 0 : i32
    %c0_i32_0 = arith.constant 0 : i32
    %c0_i32_1 = arith.constant 0 : i32
    return %c0_i32, %c0_i32_0 : i32, i32
  }
  func.func @transform_2(%arg0: i32) -> (i32, i32) {
    %c0_i32 = arith.constant 0 : i32
    %c0_i32_0 = arith.constant 0 : i32
    %c0_i32_1 = arith.constant 0 : i32
    return %c0_i32, %c0_i32_0 : i32, i32
  }
  func.func @transform_3(%arg0: i32) -> (i32, i32) {
    %c0_i32 = arith.constant 0 : i32
    %c0_i32_0 = arith.constant 0 : i32
    %c0_i32_1 = arith.constant 0 : i32
    return %c0_i32, %c0_i32_0 : i32, i32
  }
  func.func @transform_4(%arg0: i32) -> (i32, i32) {
    %c0_i32 = arith.constant 0 : i32
    %c0_i32_0 = arith.constant 0 : i32
    %c0_i32_1 = arith.constant 0 : i32
    return %c0_i32, %c0_i32_0 : i32, i32
  }
  func.func @transform_5(%arg0: i32) -> (i32, i32) {
    %c0_i32 = arith.constant 0 : i32
    %c0_i32_0 = arith.constant 0 : i32
    %c0_i32_1 = arith.constant 0 : i32
    return %c0_i32, %c0_i32_0 : i32, i32
  }
  func.func @transform_6(%arg0: i32) -> (i32, i32) {
    %c0_i32 = arith.constant 0 : i32
    %c0_i32_0 = arith.constant 0 : i32
    %c0_i32_1 = arith.constant 0 : i32
    return %c0_i32, %c0_i32_0 : i32, i32
  }
  func.func @transform_7(%arg0: i32) -> (i32, i32) {
    %c0_i32 = arith.constant 0 : i32
    %c0_i32_0 = arith.constant 0 : i32
    return %arg0, %c0_i32 : i32, i32
  }
}

</mosaic_0001>

<bundles_post_ra>
// kernel: tpu_custom_call.1
= control target key start
LH: loop header
LB: loop body
LE: loop exit
PB: predicated region body
PF: predicated region fallthrough
CT: control target
= control target key end

     0   :  { %v396_v1 = vmov 0.0   ;;  %vm397_vm0 = vmmov 0   ;;  %vm44_vm1 = vcmask 130048   ;;  %s496_s0 = inlined_call_operand.vmem [shape: bf16[8,16], index: 0, kind: input, shape index: {}]   ;;  %s497_s1 = inlined_call_operand.vmem [shape: bf16[16,128], index: 1, kind: input, shape index: {}]   ;;  %s498_s2 = inlined_call_operand.vmem [shape: f32[1,128], index: 2, kind: input, shape index: {}]   ;;  %s499_s3 = inlined_call_operand.vmem [shape: bf16[128,32], index: 3, kind: input, shape index: {}]   ;;  %s500_s4 = inlined_call_operand.vmem [shape: f32[1,32], index: 4, kind: input, shape index: {}]   ;;  %s501_s5 = inlined_call_operand.vmem [shape: bf16[32,128], index: 5, kind: input, shape index: {}]   ;;  %s502_s6 = inlined_call_operand.vmem [shape: f32[1,128], index: 6, kind: input, shape index: {}]   ;;  %s503_s7 = inlined_call_operand.hbm [shape: f32[8,128], index: 7, kind: output, shape index: {}]  }
   0x1   :  { %v357_v0 = vld [vmem:[%s497_s1] sm:$0xff]   ;;  %320 = vmatprep.subr.bf16.mxu0 %v396_v1  ;;  %326 = vmatprep.subr.bf16.mxu1 %v396_v1  ;;  %v359_v4 = vld [vmem:[%s499_s3 + $0x8] sm:$0xff]   ;;  %v360_v5 = vld [vmem:[%s499_s3 + $0x10] sm:$0xff]  }
   0x2   :  { %v28_v2 = vld [vmem:[%s496_s0] sm:$0xf]  ;;  %321 = vmatpush3.bf16.msra.mxu0 %v357_v0  ;;  %322 = vmatprep.mubr.msk.bf16.mxu0 %vm397_vm0, %v396_v1 }
   0x3   :  { %v358_v3 = vld [vmem:[%s499_s3] sm:$0xff]   ;;  %342 = vmatprep.mubr.msk.bf16.mxu1 %vm397_vm0, %v396_v1  ;;  %346 = vmatprep.subr.bf16.mxu0 %v396_v1 }
   0x4   :  { %327 = vmatpush3.bf16.msra.mxu1 %v358_v3 }
   0x5   :  { %323 = vmatmul.mubr.msk.bf16.vlgmr.msra.gmra.mrb[0].mxu0 %vm44_vm1, %v28_v2  ;;  %328 = vmatprep.subr.bf16.mxu1 %v396_v1 }
   0x6   :  { %350 = vmatprep.mubr.msk.bf16.mxu0 %vm397_vm0, %v396_v1 }
   0x8   :  { %329 = vmatpush3.bf16.msra.mxu1 %v359_v4 }
   0x9   :  { %330 = vmatprep.subr.bf16.mxu1 %v396_v1 }
   0xa   :  { %12 = vsyncpa [#allocation3], 0  ;;  %v361_v6 = vld [vmem:[%s499_s3 + $0x18] sm:$0xff]   ;;  %v362_v7 = vld [vmem:[%s499_s3 + $0x20] sm:$0xff]   ;;  %vm226_vm2 = vcmask 261120  }
   0xb   :  { %v363_v8 = vld [vmem:[%s499_s3 + $0x28] sm:$0xff]   ;;  %v364_v9 = vld [vmem:[%s499_s3 + $0x30] sm:$0xff]   ;;  %v365_v10 = vld [vmem:[%s499_s3 + $0x38] sm:$0xff]  }
   0xc   :  { %331 = vmatpush3.bf16.msra.mxu1 %v360_v5  ;;  %v366_v11 = vld [vmem:[%s501_s5] sm:$0xff]   ;;  %v367_v20 = vld [vmem:[%s501_s5 + $0x8] sm:$0xff]  }
   0xd   :  { %332 = vmatprep.subr.bf16.mxu1 %v396_v1  ;;  %347 = vmatpush3.bf16.msra.mxu0 %v366_v11  ;;  %v290_v12 = vld [vmem:[%s498_s2] ss:$0 sm:$0xff] }
   0xe   :  { %348 = vmatprep.subr.bf16.mxu0 %v396_v1  ;;  %v293_v21 = vld [vmem:[%s500_s4] ss:$0 sm:$0xff]  ;;  %s398_s4 = smov [#allocation2]  }
   0xf   :  { %v302_v29 = vld [vmem:[%s502_s6] ss:$0 sm:$0xff]  ;;  %s282_s5 = sshll.u32 %s398_s4, 4  ;;  %s283_s5 = int_to_ptr.vmem [resolvable:$true] %s282_s5 }
  0x10   :  { %333 = vmatpush3.bf16.msra.mxu1 %v361_v6  ;;  %s372_s27 = scalar_lea.vmem %s283_s5, 128  ;;  %p377_p1 = scmp.lt.s32.totalorder %s283_s5, %s283_s5 }
  0x11   :  { %334 = vmatprep.subr.bf16.mxu1 %v396_v1  ;;  %349 = vmatpush3.bf16.msra.mxu0 %v367_v20  ;;  %p373_p0 = scmp.ne.s32.totalorder %s283_s5, %s372_s27  ;;  %p378_p2 = scmp.lt.s32.totalorder %s372_s27, %s372_s27 }
  0x13   :  { %p379_p3 = por %p378_p2, %p377_p1 }
  0x14   :  { %335 = vmatpush3.bf16.msra.mxu1 %v362_v7 }
  0x15   :  { %336 = vmatprep.subr.bf16.mxu1 %v396_v1  ;;  %p380_p4 = pnand %p379_p3, %p373_p0 }
  0x18   :  { %337 = vmatpush3.bf16.msra.mxu1 %v363_v8 }
  0x19   :  { %338 = vmatprep.subr.bf16.mxu1 %v396_v1 }
  0x1c   :  { %339 = vmatpush3.bf16.msra.mxu1 %v364_v9 }
  0x1d   :  { %340 = vmatprep.subr.bf16.mxu1 %v396_v1 }
  0x20   :  { %341 = vmatpush3.bf16.msra.mxu1 %v365_v10 }
  0xd8   :  { %v82_v13 = vpop.f32.mrb[0].mxu0 }
  0xd9   :  { %v83_v14 = vadd.f32 %v290_v12, %v82_v13  ;;  %v324_v15 = vpop.f32.mrb[1].mxu0 }
  0xda   :  { %v85_v16 = vpop.f32.mrb[2].mxu0 }
  0xdb   :  { %v88_v17 = vmax.f32 %v83_v14, 0.0  ;;  %v325_v18 = vpop.f32.mrb[3].mxu0 }
  0xdd   :  { %v89_v19 = vpack.c.bf16 %v88_v17, %v88_v17 }
  0xdf   :  { %343 = vmatmul.mubr.bf16.vlgmr.msra.gmra.mrb[0].mxu1 %v89_v19 }
 0x1b2   :  { %v195_v22 = vpop.f32.mrb[0].mxu1 }
 0x1b3   :  { %v196_v23 = vadd.f32 %v293_v21, %v195_v22  ;;  %v344_v24 = vpop.f32.mrb[1].mxu1 }
 0x1b4   :  { %v198_v25 = vpop.f32.mrb[2].mxu1 }
 0x1b5   :  { %v201_v26 = vmax.f32 %v196_v23, 0.0  ;;  %v345_v27 = vpop.f32.mrb[3].mxu1 }
 0x1b7   :  { %v202_v28 = vpack.c.bf16 %v201_v26, %v201_v26 }
 0x1b9   :  { %351 = vmatmul.mubr.msk.bf16.vlgmr.msra.gmra.mrb[4].mxu0 %vm226_vm2, %v202_v28 }
 0x28c   :  { %v264_v30 = vpop.f32.mrb[4].mxu0 }
 0x28d   :  { %v265_v31 = vadd.f32 %v302_v29, %v264_v30  ;;  %v352_v32 = vpop.f32.mrb[5].mxu0 }
 0x28e   :  { %v267_v33 = vpop.f32.mrb[6].mxu0 }
 0x28f   :  { %v270_v34 = vsub.f32 0.0, %v265_v31  ;;  %v353_v35 = vpop.f32.mrb[7].mxu0 }
 0x291   :  { %v271_v36 = vmul.f32 1.442695, %v270_v34 }
 0x293   :  { %368 = vpow2.f32 %v271_v36 }
 0x29d   :  { %v369_v37 = vpop.eup %368 }
 0x29e   :  { %v273_v38 = vadd.f32 1.0, %v369_v37 }
 0x2a0   :  { %370 = vrcp.f32 %v273_v38 }
 0x2aa   :  { %v371_v39 = vpop.eup %370 }
 0x2ab   :  { %275 = vst [vmem:[#allocation2] sm:$0xff] %v371_v39 }
 0x2ac   :  { %383 = shalt.err (!%p380_p4)
}
 0x2ad   :  { %s384_s29 = scalar_lea.hbm %s503_s7, 128 }
 0x2ae   :  { %p385_p5 = scmp.ne.s32.totalorder %s503_s7, %s384_s29  ;;  %p388_p6 = scmp.lt.u32.totalorder %s384_s29, %s503_s7 }
 0x2b0   :  { %p390_p7 = pnand %p388_p6, %p385_p5 }
 0x2b2   :  { %393 = shalt.err (!%p390_p7)
}
 0x2b3   :  { %285 = dma.vmem_to_hbm [thread:$0]  %s283_s5, 128, %s503_s7, [#allocation3]  }
 0x2b4   :  { %394 = dma.done.wait [#allocation3], 128  }
 0x2b5   :  { %395 = vsyncadd [#allocation3], 4294967168 }
 0x2b6   :  { %289 = vsyncpa [#allocation3], 1 }

</bundles_post_ra>
